<compile_context>
chip_gen: v6e
topology: v6e:2x2x1
jax: 0.10.0
libtpu: 0.0.40
codegen_flags: <defaults>
</compile_context>

<pallas_src>
import functools
import math

import jax
import jax.numpy as jnp
from jax.experimental import pallas as pl
from jax.experimental.pallas import tpu as pltpu


def _round_up(x, m):
    return ((x + m - 1) // m) * m


def _discriminator_kernel(ximg_ref, xemb_ref, w1i_ref, w1e_ref, b1_ref,
                          w2_ref, b2_ref, w3_ref, b3_ref, out_ref):
    """One batch tile of the 3-layer MLP (concat fused into layer 1)."""
    # Layer 1: img @ W1_img (bf16 MXU) + emb @ W1_emb (tiny, f32) + b1
    ximg = ximg_ref[...].astype(jnp.bfloat16)
    h1 = jnp.dot(ximg, w1i_ref[...], preferred_element_type=jnp.float32)
    h1 = h1 + jnp.dot(xemb_ref[...], w1e_ref[...],
                      preferred_element_type=jnp.float32)
    h1 = h1 + b1_ref[...]
    h1 = jnp.where(h1 >= 0.0, h1, 0.2 * h1)          # LeakyReLU(0.2)

    # Layer 2: (TILE_B, 512) @ (512, 256), bf16 MXU inputs, f32 accumulate
    h2 = jnp.dot(h1.astype(jnp.bfloat16), w2_ref[...],
                 preferred_element_type=jnp.float32) + b2_ref[...]
    h2 = jnp.where(h2 >= 0.0, h2, 0.2 * h2)          # LeakyReLU(0.2)

    # Layer 3 (256 -> 1): VPU multiply + lane reduction instead of N=1 matmul.
    logits = jnp.sum(h2 * w3_ref[...], axis=-1, keepdims=True) + b3_ref[...]
    out_ref[...] = jax.nn.sigmoid(logits).astype(out_ref.dtype)


@jax.jit
def discriminator_forward(img, labels, params):
    """Forward pass of the Discriminator.

    img:    (B, C, H, W) float32   (NCHW, like PyTorch)
    labels: (B,) int32             in [0, num_classes)
    params: dict from init_params.
    returns (B, 1) float32 validity scores.
    """
    B = img.shape[0]
    chw = math.prod(img.shape[1:])

    img_flat = img.reshape(B, chw)                      # free contiguous reshape
    emb = jnp.take(params["emb"], labels, axis=0)       # (B, num_classes), f32

    k_img = params["w1_img"].shape[0]                   # CHW padded to mult of 128
    if k_img != chw:
        img_flat = jnp.pad(img_flat, ((0, 0), (0, k_img - chw)))
    num_classes = params["w1_emb"].shape[0]

    # Batch tiling: multiple-of-8 sublanes, capped at 256 rows per tile.
    tile_b = min(256, _round_up(B, 8))
    b_pad = _round_up(B, tile_b)
    if b_pad != B:
        img_flat = jnp.pad(img_flat, ((0, b_pad - B), (0, 0)))
        emb = jnp.pad(emb, ((0, b_pad - B), (0, 0)))

    out = pl.pallas_call(
        _discriminator_kernel,
        out_shape=jax.ShapeDtypeStruct((b_pad, 1), jnp.float32),
        grid=(b_pad // tile_b,),
        in_specs=[
            # Activations: tiled over the batch grid axis.
            pl.BlockSpec((tile_b, k_img), lambda i: (i, 0)),
            pl.BlockSpec((tile_b, num_classes), lambda i: (i, 0)),
            # Weights / biases: same block every step -> resident in VMEM.
            pl.BlockSpec((k_img, 512), lambda i: (0, 0)),
            pl.BlockSpec((num_classes, 512), lambda i: (0, 0)),
            pl.BlockSpec((1, 512), lambda i: (0, 0)),
            pl.BlockSpec((512, 256), lambda i: (0, 0)),
            pl.BlockSpec((1, 256), lambda i: (0, 0)),
            pl.BlockSpec((1, 256), lambda i: (0, 0)),
            pl.BlockSpec((1, 1), lambda i: (0, 0)),
        ],
        out_specs=pl.BlockSpec((tile_b, 1), lambda i: (i, 0)),
        compiler_params=pltpu.CompilerParams(
            dimension_semantics=("parallel",)),   # shard batch tiles across TCs (v7x)
    )(img_flat, emb, params["w1_img"], params["w1_emb"], params["b1"],
      params["w2"], params["b2"], params["w3"], params["b3"])
    return out[:B]


def init_params(key, img_shape, num_classes):
    """Init mirroring the PyTorch module's parameter shapes.

    nn.Linear default init: U(-1/sqrt(fan_in), 1/sqrt(fan_in)); nn.Embedding: N(0,1).
    W1 is split into the image part (zero-padded to a multiple of 128 rows,
    stored bf16) and the embedding part (f32). W2 is bf16, W3 is stored as a
    (1, 256) f32 row for the in-kernel VPU reduction.
    """
    chw = math.prod(img_shape)
    in_dim = num_classes + chw
    k_pad = _round_up(chw, 128)
    keys = jax.random.split(key, 7)

    def linear(kw, kb, fan_in, fan_out):
        bound = 1.0 / math.sqrt(fan_in)
        w = jax.random.uniform(kw, (fan_in, fan_out), jnp.float32, -bound, bound)
        b = jax.random.uniform(kb, (1, fan_out), jnp.float32, -bound, bound)
        return w, b

    emb = jax.random.normal(keys[0], (num_classes, num_classes), jnp.float32)
    w1, b1 = linear(keys[1], keys[2], in_dim, 512)
    w2, b2 = linear(keys[3], keys[4], 512, 256)
    w3, b3 = linear(keys[5], keys[6], 256, 1)

    # Concat order is [img_flat, emb]: rows [:chw] of W1 act on the image,
    # rows [chw:] on the label embedding. Zero-pad the image block to k_pad.
    w1_img = jnp.zeros((k_pad, 512), jnp.float32).at[:chw].set(w1[:chw])
    w1_emb = w1[chw:]

    return {
        "emb": emb,
        "w1_img": w1_img.astype(jnp.bfloat16),
        "w1_emb": w1_emb,                      # tiny, keep f32
        "b1": b1,
        "w2": w2.astype(jnp.bfloat16),
        "b2": b2,
        "w3": w3.reshape(1, 256),              # row form, f32
        "b3": b3,
    }


def _reference_forward(img, labels, params):
    """Pure-JAX reference using the same bf16-matmul numerics as the kernel."""
    B = img.shape[0]
    chw = math.prod(img.shape[1:])
    k_img = params["w1_img"].shape[0]
    img_flat = img.reshape(B, chw)
    if k_img != chw:
        img_flat = jnp.pad(img_flat, ((0, 0), (0, k_img - chw)))
    emb = jnp.take(params["emb"], labels, axis=0)

    h = (jnp.dot(img_flat.astype(jnp.bfloat16), params["w1_img"],
                 preferred_element_type=jnp.float32)
         + jnp.dot(emb, params["w1_emb"], preferred_element_type=jnp.float32)
         + params["b1"])
    h = jnp.where(h >= 0, h, 0.2 * h)
    h = jnp.dot(h.astype(jnp.bfloat16), params["w2"],
                preferred_element_type=jnp.float32) + params["b2"]
    h = jnp.where(h >= 0, h, 0.2 * h)
    logits = jnp.sum(h * params["w3"], axis=-1, keepdims=True) + params["b3"]
    return jax.nn.sigmoid(logits)


if __name__ == "__main__":
    key = jax.random.PRNGKey(0)
    img_shape = (1, 16, 16)   # (C, H, W) -> CHW = 256 (lane-aligned)
    num_classes = 10
    batch = 8

    k_param, k_img, k_lab = jax.random.split(key, 3)
    params = init_params(k_param, img_shape, num_classes)
    img = jax.random.normal(k_img, (batch,) + img_shape, jnp.float32)
    labels = jax.random.randint(k_lab, (batch,), 0, num_classes, jnp.int32)

    out = jax.block_until_ready(discriminator_forward(img, labels, params))
    ref = _reference_forward(img, labels, params)

    assert out.shape == (batch, 1), out.shape
    assert jnp.allclose(out, ref, atol=1e-4, rtol=1e-4), \
        f"max abs err {jnp.max(jnp.abs(out - ref))}"
    print("KERNEL_OK")
</pallas_src>

<mosaic_0001>
module attributes {stable_mosaic.version = 11 : i64} {
  func.func @_discriminator_kernel(%arg0: i32, %arg1: memref<8x256xf32, #tpu.memory_space<vmem>>, %arg2: memref<8x10xf32, #tpu.memory_space<vmem>>, %arg3: memref<256x512xbf16, #tpu.memory_space<vmem>>, %arg4: memref<10x512xf32, #tpu.memory_space<vmem>>, %arg5: memref<1x512xf32, #tpu.memory_space<vmem>>, %arg6: memref<512x256xbf16, #tpu.memory_space<vmem>>, %arg7: memref<1x256xf32, #tpu.memory_space<vmem>>, %arg8: memref<1x256xf32, #tpu.memory_space<vmem>>, %arg9: memref<1x1xf32, #tpu.memory_space<vmem>>, %arg10: memref<8x1xf32, #tpu.memory_space<vmem>>) attributes {dimension_semantics = [#tpu.dimension_semantics<parallel>], iteration_bounds = array<i64: 1>, scalar_prefetch = 0 : i64, scratch_operands = 0 : i64, tpu.core_type = #tpu.core_type<tc>, window_params = [{transform_indices = @transform_0, window_bounds = array<i64: 8, 256>}, {transform_indices = @transform_1, window_bounds = array<i64: 8, 10>}, {pipeline_mode = #tpu.pipeline_mode<synchronous>, transform_indices = @transform_2, window_bounds = array<i64: 256, 512>}, {pipeline_mode = #tpu.pipeline_mode<synchronous>, transform_indices = @transform_3, window_bounds = array<i64: 10, 512>}, {pipeline_mode = #tpu.pipeline_mode<synchronous>, transform_indices = @transform_4, window_bounds = array<i64: 1, 512>}, {pipeline_mode = #tpu.pipeline_mode<synchronous>, transform_indices = @transform_5, window_bounds = array<i64: 512, 256>}, {pipeline_mode = #tpu.pipeline_mode<synchronous>, transform_indices = @transform_6, window_bounds = array<i64: 1, 256>}, {pipeline_mode = #tpu.pipeline_mode<synchronous>, transform_indices = @transform_7, window_bounds = array<i64: 1, 256>}, {pipeline_mode = #tpu.pipeline_mode<synchronous>, transform_indices = @transform_8, window_bounds = array<i64: 1, 1>}, {transform_indices = @transform_9, window_bounds = array<i64: 8, 1>}]} {
    %c0 = arith.constant 0 : index
    %c0_0 = arith.constant 0 : index
    %0 = vector.load %arg1[%c0, %c0_0] : memref<8x256xf32, #tpu.memory_space<vmem>>, vector<8x256xf32>
    %1 = arith.truncf %0 : vector<8x256xf32> to vector<8x256xbf16>
    %c0_1 = arith.constant 0 : index
    %c0_2 = arith.constant 0 : index
    %2 = vector.load %arg3[%c0_1, %c0_2] : memref<256x512xbf16, #tpu.memory_space<vmem>>, vector<256x512xbf16>
    %cst = arith.constant dense<0.000000e+00> : vector<8x512xf32>
    %3 = tpu.matmul %1, %2, %cst {dimension_numbers = #tpu.dot_dimension_numbers<[1], [0], [0], [1], [0, 0, 1, 1], [], []>} : vector<8x256xbf16>, vector<256x512xbf16>, vector<8x512xf32> -> vector<8x512xf32>
    %c0_3 = arith.constant 0 : index
    %c0_4 = arith.constant 0 : index
    %4 = vector.load %arg2[%c0_3, %c0_4] : memref<8x10xf32, #tpu.memory_space<vmem>>, vector<8x10xf32>
    %c0_5 = arith.constant 0 : index
    %c0_6 = arith.constant 0 : index
    %5 = vector.load %arg4[%c0_5, %c0_6] : memref<10x512xf32, #tpu.memory_space<vmem>>, vector<10x512xf32>
    %cst_7 = arith.constant dense<0.000000e+00> : vector<8x512xf32>
    %6 = tpu.matmul %4, %5, %cst_7 {dimension_numbers = #tpu.dot_dimension_numbers<[1], [0], [0], [1], [0, 0, 1, 1], [], []>} : vector<8x10xf32>, vector<10x512xf32>, vector<8x512xf32> -> vector<8x512xf32>
    %7 = arith.addf %3, %6 : vector<8x512xf32>
    %c0_8 = arith.constant 0 : index
    %c0_9 = arith.constant 0 : index
    %8 = vector.load %arg5[%c0_8, %c0_9] : memref<1x512xf32, #tpu.memory_space<vmem>>, vector<1x512xf32>
    %9 = vector.broadcast %8 : vector<1x512xf32> to vector<8x512xf32>
    %10 = arith.addf %7, %9 : vector<8x512xf32>
    %cst_10 = arith.constant 0.000000e+00 : f32
    %11 = vector.broadcast %cst_10 : f32 to vector<8x512xf32>
    %12 = arith.cmpf oge, %10, %11 : vector<8x512xf32>
    %cst_11 = arith.constant 2.000000e-01 : f32
    %13 = vector.broadcast %cst_11 : f32 to vector<8x512xf32>
    %14 = arith.mulf %13, %10 : vector<8x512xf32>
    %15 = arith.select %12, %10, %14 : vector<8x512xi1>, vector<8x512xf32>
    %16 = arith.truncf %15 : vector<8x512xf32> to vector<8x512xbf16>
    %c0_12 = arith.constant 0 : index
    %c0_13 = arith.constant 0 : index
    %17 = vector.load %arg6[%c0_12, %c0_13] : memref<512x256xbf16, #tpu.memory_space<vmem>>, vector<512x256xbf16>
    %cst_14 = arith.constant dense<0.000000e+00> : vector<8x256xf32>
    %18 = tpu.matmul %16, %17, %cst_14 {dimension_numbers = #tpu.dot_dimension_numbers<[1], [0], [0], [1], [0, 0, 1, 1], [], []>} : vector<8x512xbf16>, vector<512x256xbf16>, vector<8x256xf32> -> vector<8x256xf32>
    %c0_15 = arith.constant 0 : index
    %c0_16 = arith.constant 0 : index
    %19 = vector.load %arg7[%c0_15, %c0_16] : memref<1x256xf32, #tpu.memory_space<vmem>>, vector<1x256xf32>
    %20 = vector.broadcast %19 : vector<1x256xf32> to vector<8x256xf32>
    %21 = arith.addf %18, %20 : vector<8x256xf32>
    %cst_17 = arith.constant 0.000000e+00 : f32
    %22 = vector.broadcast %cst_17 : f32 to vector<8x256xf32>
    %23 = arith.cmpf oge, %21, %22 : vector<8x256xf32>
    %cst_18 = arith.constant 2.000000e-01 : f32
    %24 = vector.broadcast %cst_18 : f32 to vector<8x256xf32>
    %25 = arith.mulf %24, %21 : vector<8x256xf32>
    %26 = arith.select %23, %21, %25 : vector<8x256xi1>, vector<8x256xf32>
    %c0_19 = arith.constant 0 : index
    %c0_20 = arith.constant 0 : index
    %27 = vector.load %arg8[%c0_19, %c0_20] : memref<1x256xf32, #tpu.memory_space<vmem>>, vector<1x256xf32>
    %28 = vector.broadcast %27 : vector<1x256xf32> to vector<8x256xf32>
    %29 = arith.mulf %26, %28 : vector<8x256xf32>
    %cst_21 = arith.constant dense<0.000000e+00> : vector<8xf32>
    %30 = vector.multi_reduction <add>, %29, %cst_21 [1] : vector<8x256xf32> to vector<8xf32>
    %31 = vector.shape_cast %30 : vector<8xf32> to vector<8x1xf32>
    %c0_22 = arith.constant 0 : index
    %c0_23 = arith.constant 0 : index
    %32 = vector.load %arg9[%c0_22, %c0_23] : memref<1x1xf32, #tpu.memory_space<vmem>>, vector<1x1xf32>
    %33 = vector.broadcast %32 : vector<1x1xf32> to vector<8x1xf32>
    %34 = arith.addf %31, %33 : vector<8x1xf32>
    %35 = arith.negf %34 : vector<8x1xf32>
    %36 = math.exp %35 : vector<8x1xf32>
    %cst_24 = arith.constant 1.000000e+00 : f32
    %37 = vector.broadcast %cst_24 : f32 to vector<8x1xf32>
    %38 = arith.addf %37, %36 : vector<8x1xf32>
    %39 = arith.divf %37, %38 : vector<8x1xf32>
    %c0_25 = arith.constant 0 : index
    %c0_26 = arith.constant 0 : index
    %40 = vector.load %arg10[%c0_25, %c0_26] : memref<8x1xf32, #tpu.memory_space<vmem>>, vector<8x1xf32>
    tpu.vector_store %arg10[%c0_25, %c0_26], %39 {strides = array<i32>} : memref<8x1xf32, #tpu.memory_space<vmem>>, vector<8x1xf32>,
    return
  }
  func.func @transform_0(%arg0: i32) -> (i32, i32) {
    %c0_i32 = arith.constant 0 : i32
    %c0_i32_0 = arith.constant 0 : i32
    return %arg0, %c0_i32 : i32, i32
  }
  func.func @transform_1(%arg0: i32) -> (i32, i32) {
    %c0_i32 = arith.constant 0 : i32
    %c0_i32_0 = arith.constant 0 : i32
    return %arg0, %c0_i32 : i32, i32
  }
  func.func @transform_2(%arg0: i32) -> (i32, i32) {
    %c0_i32 = arith.constant 0 : i32
    %c0_i32_0 = arith.constant 0 : i32
    %c0_i32_1 = arith.constant 0 : i32
    return %c0_i32, %c0_i32_0 : i32, i32
  }
  func.func @transform_3(%arg0: i32) -> (i32, i32) {
    %c0_i32 = arith.constant 0 : i32
    %c0_i32_0 = arith.constant 0 : i32
    %c0_i32_1 = arith.constant 0 : i32
    return %c0_i32, %c0_i32_0 : i32, i32
  }
  func.func @transform_4(%arg0: i32) -> (i32, i32) {
    %c0_i32 = arith.constant 0 : i32
    %c0_i32_0 = arith.constant 0 : i32
    %c0_i32_1 = arith.constant 0 : i32
    return %c0_i32, %c0_i32_0 : i32, i32
  }
  func.func @transform_5(%arg0: i32) -> (i32, i32) {
    %c0_i32 = arith.constant 0 : i32
    %c0_i32_0 = arith.constant 0 : i32
    %c0_i32_1 = arith.constant 0 : i32
    return %c0_i32, %c0_i32_0 : i32, i32
  }
  func.func @transform_6(%arg0: i32) -> (i32, i32) {
    %c0_i32 = arith.constant 0 : i32
    %c0_i32_0 = arith.constant 0 : i32
    %c0_i32_1 = arith.constant 0 : i32
    return %c0_i32, %c0_i32_0 : i32, i32
  }
  func.func @transform_7(%arg0: i32) -> (i32, i32) {
    %c0_i32 = arith.constant 0 : i32
    %c0_i32_0 = arith.constant 0 : i32
    %c0_i32_1 = arith.constant 0 : i32
    return %c0_i32, %c0_i32_0 : i32, i32
  }
  func.func @transform_8(%arg0: i32) -> (i32, i32) {
    %c0_i32 = arith.constant 0 : i32
    %c0_i32_0 = arith.constant 0 : i32
    %c0_i32_1 = arith.constant 0 : i32
    return %c0_i32, %c0_i32_0 : i32, i32
  }
  func.func @transform_9(%arg0: i32) -> (i32, i32) {
    %c0_i32 = arith.constant 0 : i32
    %c0_i32_0 = arith.constant 0 : i32
    return %arg0, %c0_i32 : i32, i32
  }
}

</mosaic_0001>

<bundles_post_ra>
// kernel: discriminator_forward.1
= control target key start
LH: loop header
LB: loop body
LE: loop exit
PB: predicated region body
PF: predicated region fallthrough
CT: control target
= control target key end

     0   :  { %s1769_s0 = inlined_call_operand.vmem [shape: f32[8,256], index: 0, kind: input, shape index: {}]   ;;  %s1770_s1 = inlined_call_operand.vmem [shape: f32[8,10], index: 1, kind: input, shape index: {}]   ;;  %s1771_s2 = inlined_call_operand.hbm [shape: bf16[256,512], index: 2, kind: input, shape index: {}]   ;;  %s1772_s3 = inlined_call_operand.vmem [shape: f32[10,512], index: 3, kind: input, shape index: {}]   ;;  %s1773_s4 = inlined_call_operand.vmem [shape: f32[1,512], index: 4, kind: input, shape index: {}]   ;;  %s1774_s5 = inlined_call_operand.hbm [shape: bf16[512,256], index: 5, kind: input, shape index: {}]   ;;  %s1775_s6 = inlined_call_operand.vmem [shape: f32[1,256], index: 6, kind: input, shape index: {}]   ;;  %s1776_s7 = inlined_call_operand.vmem [shape: f32[1,256], index: 7, kind: input, shape index: {}]   ;;  %s1777_s8 = inlined_call_operand.<no memory space> [shape: f32[1,1], index: 8, kind: input, shape index: {}]   ;;  %s1778_s9 = inlined_call_operand.vmem [shape: f32[8,1], index: 9, kind: output, shape index: {}]  }
   0x1   :  { %v14_v0 = vstv %s1777_s8 }
   0x2   :  { %15 = vst [vmem:[#allocation2] sm:$0x1] %v14_v0 }
   0x3   :  { %16 = vsyncpa [#allocation4], 0 }
   0x4   :  { %17 = vsyncpa [#allocation6], 0  ;;  %s1648_s11 = smov [#allocation3]  }
   0x5   :  { %s27_s12 = sshll.u32 %s1648_s11, 4  ;;  %s28_s12 = int_to_ptr.vmem [resolvable:$true] %s27_s12 }
   0x6   :  { %s1612_s13 = scalar_lea.vmem %s28_s12, 8192  ;;  %p1617_p1 = scmp.lt.s32.totalorder %s28_s12, %s28_s12 }
   0x7   :  { %p1613_p0 = scmp.ne.s32.totalorder %s28_s12, %s1612_s13  ;;  %p1618_p2 = scmp.lt.s32.totalorder %s1612_s13, %s1612_s13 }
   0x9   :  { %p1619_p3 = por %p1618_p2, %p1617_p1 }
   0xb   :  { %p1620_p4 = pnand %p1619_p3, %p1613_p0 }
   0xd   :  { %1623 = shalt.err (!%p1620_p4)
}
   0xe   :  { %s1649_s14 = smov 256   ;;  %s1650_s15 = smov 16  }
   0xf   :  { %33 = dma.hbm_to_vmem [thread:$0]  %s1771_s2, 8192, %s28_s12, [#allocation4], %s1649_s14, %s1649_s14, %s1650_s15  }
  0x10   :  { %s1651_s8 = smov [#allocation5]  }
  0x11   :  { %s43_s18 = sshll.u32 %s1651_s8, 4  ;;  %s44_s18 = int_to_ptr.vmem [resolvable:$true] %s43_s18 }
  0x12   :  { %s1632_s19 = scalar_lea.vmem %s44_s18, 8192  ;;  %p1637_p6 = scmp.lt.s32.totalorder %s44_s18, %s44_s18 }
  0x13   :  { %p1633_p5 = scmp.ne.s32.totalorder %s44_s18, %s1632_s19  ;;  %p1638_p7 = scmp.lt.s32.totalorder %s1632_s19, %s1632_s19 }
  0x15   :  { %p1639_p8 = por %p1638_p7, %p1637_p6 }
  0x17   :  { %p1640_p9 = pnand %p1639_p8, %p1633_p5 }
  0x19   :  { %1643 = shalt.err (!%p1640_p9)
}
  0x1a   :  { %s1652_s20 = smov 128   ;;  %s1653_s21 = smov 8  }
  0x1b   :  { %49 = dma.hbm_to_vmem [thread:$0]  %s1774_s5, 8192, %s44_s18, [#allocation6], %s1652_s20, %s1652_s20, %s1653_s21  }
  0x1c   :  { %1644 = dma.done.wait [#allocation4], 8192  }
  0x1d   :  { %1645 = vsyncadd [#allocation4], 4294959104 }
  0x1e   :  { %1646 = dma.done.wait [#allocation6], 8192  }
  0x1f   :  { %1647 = vsyncadd [#allocation6], 4294959104  ;;  %v1654_v1 = vmov 0.0   ;;  %vm143_vm0 = vcmask 1041408   ;;  %v136_v2 = vld [vmem:[%s1772_s3 + $0x28] sm:$0x3] }
  0x20   :  { %220 = vmatprep.mubr.f32.mxu0 %v1654_v1  ;;  %291 = vmatprep.mubr.f32.mxu1 %v1654_v1  ;;  %v138_v3 = vld [vmem:[%s1772_s3 + $0x38] sm:$0x3]  ;;  %v135_v4 = vld [vmem:[%s1772_s3 + $0x20] sm:$0x3]  ;;  %v137_v5 = vld [vmem:[%s1772_s3 + $0x30] sm:$0x3] }
  0x21   :  { %1265 = vmatprep.subr.msk.mxu0 %vm143_vm0, %v136_v2  ;;  %1268 = vmatprep.subr.msk.mxu1 %vm143_vm0, %v138_v3  ;;  %v132_v6 = vld [vmem:[%s1772_s3 + $0x8] sm:$0xff]  ;;  %v134_v7 = vld [vmem:[%s1772_s3 + $0x18] sm:$0xff]  ;;  %v131_v8 = vld [vmem:[%s1772_s3] sm:$0xff]  ;;  %vm139_vm1 = vcmask 80896   ;;  %vm1257_vm8 = vcmask 7168  }
  0x22   :  { %1266 = vmatpush1.msk.msra.mxu0 %vm143_vm0, %v135_v4  ;;  %1269 = vmatpush1.msk.msra.mxu1 %vm143_vm0, %v137_v5  ;;  %v133_v9 = vld [vmem:[%s1772_s3 + $0x10] sm:$0xff]  ;;  %v130_v10 = vld [vmem:[%s1770_s1] sm:$0xff]  ;;  %v1411_v13 = vld [vmem:[#allocation3 + $0xe8] ss:$16 sps:$4 sm:$0xff]  }
  0x23   :  { %186 = vmatprep.subr.mxu0 %v132_v6  ;;  %257 = vmatprep.subr.mxu1 %v134_v7  ;;  %v1408_v11 = vld [vmem:[#allocation3 + $0xe0] ss:$16 sps:$4 sm:$0xff]   ;;  %v1410_v12 = vld [vmem:[#allocation3 + $0xe4] ss:$16 sps:$4 sm:$0xff]   ;;  %v1413_v14 = vld [vmem:[#allocation3 + $0xec] ss:$16 sps:$4 sm:$0xff]  }
  0x24   :  { %187 = vmatpush1.msra.mxu0 %v131_v8  ;;  %258 = vmatpush1.msra.mxu1 %v133_v9  ;;  %v1414_v15 = vld [vmem:[#allocation3 + $0xc0] ss:$16 sps:$4 sm:$0xff]   ;;  %v1416_v16 = vld [vmem:[#allocation3 + $0xc4] ss:$16 sps:$4 sm:$0xff]   ;;  %v1417_v17 = vld [vmem:[#allocation3 + $0xc8] ss:$16 sps:$4 sm:$0xff]  }
  0x25   :  { %1267 = vmatmul.mubr.msk.f32.vlgmr.msra.gmra.mxu0 %vm139_vm1, %v130_v10  ;;  %1270 = vmatmul.mubr.msk.f32.vlgmr.msra.gmra.mxu1 %vm139_vm1, %v130_v10  ;;  %v1419_v18 = vld [vmem:[#allocation3 + $0xcc] ss:$16 sps:$4 sm:$0xff]   ;;  %v1422_v19 = vld [vmem:[#allocation3 + $0xa4] ss:$16 sps:$4 sm:$0xff]   ;;  %v1420_v20 = vld [vmem:[#allocation3 + $0xa0] ss:$16 sps:$4 sm:$0xff]  }
  0x26   :  { %618 = vmatprep.subr.bf16.mxu0 %v1410_v12  ;;  %659 = vmatprep.subr.bf16.mxu1 %v1413_v14  ;;  %v1425_v21 = vld [vmem:[#allocation3 + $0xac] ss:$16 sps:$4 sm:$0xff]   ;;  %v1423_v22 = vld [vmem:[#allocation3 + $0xa8] ss:$16 sps:$4 sm:$0xff]   ;;  %v1428_v23 = vld [vmem:[#allocation3 + $0x84] ss:$16 sps:$4 sm:$0xff]  }
  0x27   :  { %619 = vmatpush1.bf16.msra.mxu0 %v1408_v11  ;;  %660 = vmatpush1.bf16.msra.mxu1 %v1411_v13  ;;  %v1431_v24 = vld [vmem:[#allocation3 + $0x8c] ss:$16 sps:$4 sm:$0xff]   ;;  %v1426_v25 = vld [vmem:[#allocation3 + $0x80] ss:$16 sps:$4 sm:$0xff]   ;;  %v1429_v26 = vld [vmem:[#allocation3 + $0x88] ss:$16 sps:$4 sm:$0xff]  }
  0x28   :  { %620 = vmatprep.subr.bf16.mxu0 %v1416_v16  ;;  %661 = vmatprep.subr.bf16.mxu1 %v1419_v18  ;;  %v1434_v27 = vld [vmem:[#allocation3 + $0x64] ss:$16 sps:$4 sm:$0xff]   ;;  %v1437_v28 = vld [vmem:[#allocation3 + $0x6c] ss:$16 sps:$4 sm:$0xff]   ;;  %v1432_v29 = vld [vmem:[#allocation3 + $0x60] ss:$16 sps:$4 sm:$0xff]  }
  0x29   :  { %v1435_v30 = vld [vmem:[#allocation3 + $0x68] ss:$16 sps:$4 sm:$0xff]   ;;  %v1440_v31 = vld [vmem:[#allocation3 + $0x44] ss:$16 sps:$4 sm:$0xff]   ;;  %v1443_v32 = vld [vmem:[#allocation3 + $0x4c] ss:$16 sps:$4 sm:$0xff]  }
  0x2a   :  { %v1438_v33 = vld [vmem:[#allocation3 + $0x40] ss:$16 sps:$4 sm:$0xff]   ;;  %v1441_v34 = vld [vmem:[#allocation3 + $0x48] ss:$16 sps:$4 sm:$0xff]   ;;  %v1446_v35 = vld [vmem:[#allocation3 + $0x24] ss:$16 sps:$4 sm:$0xff]  }
  0x2b   :  { %621 = vmatpush1.bf16.msra.mxu0 %v1414_v15  ;;  %662 = vmatpush1.bf16.msra.mxu1 %v1417_v17  ;;  %v1449_v36 = vld [vmem:[#allocation3 + $0x2c] ss:$16 sps:$4 sm:$0xff]   ;;  %v1444_v37 = vld [vmem:[#allocation3 + $0x20] ss:$16 sps:$4 sm:$0xff]   ;;  %v1447_v38 = vld [vmem:[#allocation3 + $0x28] ss:$16 sps:$4 sm:$0xff]  }
  0x2c   :  { %622 = vmatprep.subr.bf16.mxu0 %v1422_v19  ;;  %663 = vmatprep.subr.bf16.mxu1 %v1425_v21  ;;  %v1452_v39 = vld [vmem:[#allocation3 + $0x4] ss:$16 sps:$4 sm:$0xff]   ;;  %v1455_v40 = vld [vmem:[#allocation3 + $0xc] ss:$16 sps:$4 sm:$0xff]   ;;  %v1450_v41 = vld [vmem:[#allocation3] ss:$16 sps:$4 sm:$0xff]  }
  0x2d   :  { %v1453_v42 = vld [vmem:[#allocation3 + $0x8] ss:$16 sps:$4 sm:$0xff]   ;;  %v1458_v43 = vld [vmem:[#allocation3 + $0x1e4] ss:$16 sps:$4 sm:$0xff]   ;;  %v1461_v44 = vld [vmem:[#allocation3 + $0x1ec] ss:$16 sps:$4 sm:$0xff]  }
  0x2e   :  { %v1456_v45 = vld [vmem:[#allocation3 + $0x1e0] ss:$16 sps:$4 sm:$0xff]   ;;  %v1459_v46 = vld [vmem:[#allocation3 + $0x1e8] ss:$16 sps:$4 sm:$0xff]   ;;  %v1464_v47 = vld [vmem:[#allocation3 + $0x1c4] ss:$16 sps:$4 sm:$0xff]  }
  0x2f   :  { %623 = vmatpush1.bf16.msra.mxu0 %v1420_v20  ;;  %664 = vmatpush1.bf16.msra.mxu1 %v1423_v22  ;;  %v1467_v48 = vld [vmem:[#allocation3 + $0x1cc] ss:$16 sps:$4 sm:$0xff]   ;;  %v1462_v49 = vld [vmem:[#allocation3 + $0x1c0] ss:$16 sps:$4 sm:$0xff]   ;;  %v1465_v50 = vld [vmem:[#allocation3 + $0x1c8] ss:$16 sps:$4 sm:$0xff]  }
  0x30   :  { %624 = vmatprep.subr.bf16.mxu0 %v1428_v23  ;;  %665 = vmatprep.subr.bf16.mxu1 %v1431_v24  ;;  %v1470_v51 = vld [vmem:[#allocation3 + $0x1a4] ss:$16 sps:$4 sm:$0xff]   ;;  %v1473_v52 = vld [vmem:[#allocation3 + $0x1ac] ss:$16 sps:$4 sm:$0xff]   ;;  %v1468_v53 = vld [vmem:[#allocation3 + $0x1a0] ss:$16 sps:$4 sm:$0xff]  }
  0x31   :  { %v1471_v54 = vld [vmem:[#allocation3 + $0x1a8] ss:$16 sps:$4 sm:$0xff]   ;;  %v1476_v55 = vld [vmem:[#allocation3 + $0x184] ss:$16 sps:$4 sm:$0xff]   ;;  %v1474_v56 = vld [vmem:[#allocation3 + $0x180] ss:$16 sps:$4 sm:$0xff]  }
  0x32   :  { %v1479_v57 = vld [vmem:[#allocation3 + $0x18c] ss:$16 sps:$4 sm:$0xff]   ;;  %v1477_v59 = vld [vmem:[#allocation3 + $0x188] ss:$16 sps:$4 sm:$0xff]   ;;  %v1482_v60 = vld [vmem:[#allocation3 + $0x164] ss:$16 sps:$4 sm:$0xff]  }
  0x33   :  { %625 = vmatpush1.bf16.msra.mxu0 %v1426_v25  ;;  %666 = vmatpush1.bf16.msra.mxu1 %v1429_v26  ;;  %v63_v58 = vld [vmem:[%s1769_s0 + $0x8] sm:$0xff]  ;;  %v1480_v63 = vld [vmem:[#allocation3 + $0x160] ss:$16 sps:$4 sm:$0xff]   ;;  %v1506_v16 = vld [vmem:[#allocation5 + $0x74] ss:$8 sps:$4 sm:$0xff]  }
  0x34   :  { %626 = vmatprep.subr.bf16.mxu0 %v1434_v27  ;;  %667 = vmatprep.subr.bf16.mxu1 %v1437_v28  ;;  %v65_v61 = vpack.c.bf16 %v63_v58, %v63_v58  ;;  %v1485_v62 = vld [vmem:[#allocation3 + $0x16c] ss:$16 sps:$4 sm:$0xff]   ;;  %v1483_v0 = vld [vmem:[#allocation3 + $0x168] ss:$16 sps:$4 sm:$0xff]   ;;  %v1488_v1 = vld [vmem:[#allocation3 + $0x144] ss:$16 sps:$4 sm:$0xff]  }
  0x35   :  { %v1491_v2 = vld [vmem:[#allocation3 + $0x14c] ss:$16 sps:$4 sm:$0xff]   ;;  %v1486_v3 = vld [vmem:[#allocation3 + $0x140] ss:$16 sps:$4 sm:$0xff]   ;;  %v1489_v4 = vld [vmem:[#allocation3 + $0x148] ss:$16 sps:$4 sm:$0xff]  }
  0x36   :  { %650 = vmatprep.mubr.bf16.mxu0 %v65_v61  ;;  %691 = vmatprep.mubr.bf16.mxu1 %v65_v61  ;;  %v1494_v5 = vld [vmem:[#allocation3 + $0x124] ss:$16 sps:$4 sm:$0xff]   ;;  %v1497_v6 = vld [vmem:[#allocation3 + $0x12c] ss:$16 sps:$4 sm:$0xff]   ;;  %v1492_v7 = vld [vmem:[#allocation3 + $0x120] ss:$16 sps:$4 sm:$0xff]  }
  0x37   :  { %627 = vmatpush1.bf16.msra.mxu0 %v1432_v29  ;;  %668 = vmatpush1.bf16.msra.mxu1 %v1435_v30  ;;  %v1495_v8 = vld [vmem:[#allocation3 + $0x128] ss:$16 sps:$4 sm:$0xff]   ;;  %v1500_v9 = vld [vmem:[#allocation3 + $0x104] ss:$16 sps:$4 sm:$0xff]   ;;  %v1503_v10 = vld [vmem:[#allocation3 + $0x10c] ss:$16 sps:$4 sm:$0xff]  }
  0x38   :  { %628 = vmatprep.subr.bf16.mxu0 %v1440_v31  ;;  %669 = vmatprep.subr.bf16.mxu1 %v1443_v32  ;;  %v1498_v11 = vld [vmem:[#allocation3 + $0x100] ss:$16 sps:$4 sm:$0xff]   ;;  %v1501_v13 = vld [vmem:[#allocation3 + $0x108] ss:$16 sps:$4 sm:$0xff]   ;;  %v1509_v18 = vld [vmem:[#allocation5 + $0x174] ss:$8 sps:$4 sm:$0xff]  }
  0x39   :  { %v62_v12 = vld [vmem:[%s1769_s0] sm:$0xff]  ;;  %v1504_v15 = vld [vmem:[#allocation5 + $0x70] ss:$8 sps:$4 sm:$0xff]  }
  0x3a   :  { %v64_v14 = vpack.c.bf16 %v62_v12, %v62_v12  ;;  %v1507_v17 = vld [vmem:[#allocation5 + $0x170] ss:$8 sps:$4 sm:$0xff]   ;;  %v1512_v19 = vld [vmem:[#allocation5 + $0x64] ss:$8 sps:$4 sm:$0xff]   ;;  %v1510_v21 = vld [vmem:[#allocation5 + $0x60] ss:$8 sps:$4 sm:$0xff]  }
  0x3b   :  { %629 = vmatpush1.bf16.msra.mxu0 %v1438_v33  ;;  %670 = vmatpush1.bf16.msra.mxu1 %v1441_v34  ;;  %v1515_v20 = vld [vmem:[#allocation5 + $0x164] ss:$8 sps:$4 sm:$0xff]   ;;  %v1513_v22 = vld [vmem:[#allocation5 + $0x160] ss:$8 sps:$4 sm:$0xff]   ;;  %v1518_v23 = vld [vmem:[#allocation5 + $0x54] ss:$8 sps:$4 sm:$0xff]  }
  0x3c   :  { %630 = vmatprep.subr.bf16.mxu0 %v1446_v35  ;;  %671 = vmatprep.subr.bf16.mxu1 %v1449_v36  ;;  %v1521_v24 = vld [vmem:[#allocation5 + $0x154] ss:$8 sps:$4 sm:$0xff]   ;;  %v1516_v25 = vld [vmem:[#allocation5 + $0x50] ss:$8 sps:$4 sm:$0xff]   ;;  %v1524_v27 = vld [vmem:[#allocation5 + $0x44] ss:$8 sps:$4 sm:$0xff]  }
  0x3d   :  { %v1519_v26 = vld [vmem:[#allocation5 + $0x150] ss:$8 sps:$4 sm:$0xff]   ;;  %v1527_v28 = vld [vmem:[#allocation5 + $0x144] ss:$8 sps:$4 sm:$0xff]   ;;  %v1522_v29 = vld [vmem:[#allocation5 + $0x40] ss:$8 sps:$4 sm:$0xff]  }
  0x3e   :  { %v1525_v30 = vld [vmem:[#allocation5 + $0x140] ss:$8 sps:$4 sm:$0xff]   ;;  %v1530_v31 = vld [vmem:[#allocation5 + $0x34] ss:$8 sps:$4 sm:$0xff]   ;;  %v1528_v33 = vld [vmem:[#allocation5 + $0x30] ss:$8 sps:$4 sm:$0xff]  }
  0x3f   :  { %631 = vmatpush1.bf16.msra.mxu0 %v1444_v37  ;;  %672 = vmatpush1.bf16.msra.mxu1 %v1447_v38  ;;  %v1533_v32 = vld [vmem:[#allocation5 + $0x134] ss:$8 sps:$4 sm:$0xff]   ;;  %v1531_v34 = vld [vmem:[#allocation5 + $0x130] ss:$8 sps:$4 sm:$0xff]   ;;  %v1536_v35 = vld [vmem:[#allocation5 + $0x24] ss:$8 sps:$4 sm:$0xff]  }
  0x40   :  { %632 = vmatprep.subr.bf16.mxu0 %v1452_v39  ;;  %673 = vmatprep.subr.bf16.mxu1 %v1455_v40  ;;  %v1539_v36 = vld [vmem:[#allocation5 + $0x124] ss:$8 sps:$4 sm:$0xff]   ;;  %v1534_v37 = vld [vmem:[#allocation5 + $0x20] ss:$8 sps:$4 sm:$0xff]   ;;  %v1542_v39 = vld [vmem:[#allocation5 + $0x14] ss:$8 sps:$4 sm:$0xff]  }
  0x41   :  { %v1537_v38 = vld [vmem:[#allocation5 + $0x120] ss:$8 sps:$4 sm:$0xff]   ;;  %v1545_v40 = vld [vmem:[#allocation5 + $0x114] ss:$8 sps:$4 sm:$0xff]   ;;  %v1567_v58 = vld [vmem:[#allocation5 + $0x1d0] ss:$8 sps:$4 sm:$0xff]  }
  0x42   :  { %v1570_v61 = vld [vmem:[#allocation5 + $0xc0] ss:$8 sps:$4 sm:$0xff]   ;;  %v1599_v12 = vld [vmem:[#allocation5 + $0x184] ss:$8 sps:$4 sm:$0xff]  }
  0x43   :  { %633 = vmatpush1.bf16.msra.mxu0 %v1450_v41  ;;  %674 = vmatpush1.bf16.msra.mxu1 %v1453_v42  ;;  %v1540_v41 = vld [vmem:[#allocation5 + $0x10] ss:$8 sps:$4 sm:$0xff]  }
  0x44   :  { %634 = vmatprep.subr.bf16.mxu0 %v1458_v43  ;;  %675 = vmatprep.subr.bf16.mxu1 %v1461_v44  ;;  %v1543_v42 = vld [vmem:[#allocation5 + $0x110] ss:$8 sps:$4 sm:$0xff]   ;;  %v1548_v43 = vld [vmem:[#allocation5 + $0x4] ss:$8 sps:$4 sm:$0xff]  }
  0x45   :  { %v1551_v44 = vld [vmem:[#allocation5 + $0x104] ss:$8 sps:$4 sm:$0xff]  }
  0x47   :  { %635 = vmatpush2.bf16.msra.mxu0 %v1456_v45  ;;  %676 = vmatpush2.bf16.msra.mxu1 %v1459_v46  ;;  %v1546_v45 = vld [vmem:[#allocation5] ss:$8 sps:$4 sm:$0xff]  }
  0x48   :  { %636 = vmatprep.subr.bf16.mxu0 %v1464_v47  ;;  %677 = vmatprep.subr.bf16.mxu1 %v1467_v48  ;;  %v1549_v46 = vld [vmem:[#allocation5 + $0x100] ss:$8 sps:$4 sm:$0xff]   ;;  %v1554_v47 = vld [vmem:[#allocation5 + $0xf4] ss:$8 sps:$4 sm:$0xff]  }
  0x49   :  { %v1557_v48 = vld [vmem:[#allocation5 + $0x1f4] ss:$8 sps:$4 sm:$0xff]  }
  0x4b   :  { %637 = vmatpush2.bf16.msra.mxu0 %v1462_v49  ;;  %678 = vmatpush2.bf16.msra.mxu1 %v1465_v50  ;;  %v1552_v49 = vld [vmem:[#allocation5 + $0xf0] ss:$8 sps:$4 sm:$0xff]  }
  0x4c   :  { %638 = vmatprep.subr.bf16.mxu0 %v1470_v51  ;;  %679 = vmatprep.subr.bf16.mxu1 %v1473_v52  ;;  %v1555_v50 = vld [vmem:[#allocation5 + $0x1f0] ss:$8 sps:$4 sm:$0xff]   ;;  %v1560_v51 = vld [vmem:[#allocation5 + $0xe4] ss:$8 sps:$4 sm:$0xff]  }
  0x4d   :  { %v1563_v52 = vld [vmem:[#allocation5 + $0x1e4] ss:$8 sps:$4 sm:$0xff]  }
  0x4f   :  { %639 = vmatpush2.bf16.msra.mxu0 %v1468_v53  ;;  %680 = vmatpush2.bf16.msra.mxu1 %v1471_v54  ;;  %v1558_v53 = vld [vmem:[#allocation5 + $0xe0] ss:$8 sps:$4 sm:$0xff]  }
  0x50   :  { %640 = vmatprep.subr.bf16.mxu0 %v1476_v55  ;;  %681 = vmatprep.subr.bf16.mxu1 %v1479_v57  ;;  %v1561_v54 = vld [vmem:[#allocation5 + $0x1e0] ss:$8 sps:$4 sm:$0xff]   ;;  %v1566_v55 = vld [vmem:[#allocation5 + $0xd4] ss:$8 sps:$4 sm:$0xff]   ;;  %v1564_v57 = vld [vmem:[#allocation5 + $0xd0] ss:$8 sps:$4 sm:$0xff]  }
  0x53   :  { %641 = vmatpush2.bf16.msra.mxu0 %v1474_v56  ;;  %682 = vmatpush2.bf16.msra.mxu1 %v1477_v59  ;;  %v1569_v56 = vld [vmem:[#allocation5 + $0x1d4] ss:$8 sps:$4 sm:$0xff]   ;;  %v1572_v59 = vld [vmem:[#allocation5 + $0xc4] ss:$8 sps:$4 sm:$0xff]  }
  0x54   :  { %642 = vmatprep.subr.bf16.mxu0 %v1482_v60  ;;  %683 = vmatprep.subr.bf16.mxu1 %v1485_v62  ;;  %v1575_v60 = vld [vmem:[#allocation5 + $0x1c4] ss:$8 sps:$4 sm:$0xff]   ;;  %v1573_v62 = vld [vmem:[#allocation5 + $0x1c0] ss:$8 sps:$4 sm:$0xff]  }
  0x57   :  { %643 = vmatpush2.bf16.msra.mxu0 %v1480_v63  ;;  %684 = vmatpush2.bf16.msra.mxu1 %v1483_v0  ;;  %v1578_v63 = vld [vmem:[#allocation5 + $0xb4] ss:$8 sps:$4 sm:$0xff]  }
  0x58   :  { %644 = vmatprep.subr.bf16.mxu0 %v1488_v1  ;;  %685 = vmatprep.subr.bf16.mxu1 %v1491_v2  ;;  %v1581_v0 = vld [vmem:[#allocation5 + $0x1b4] ss:$8 sps:$4 sm:$0xff]   ;;  %v1576_v1 = vld [vmem:[#allocation5 + $0xb0] ss:$8 sps:$4 sm:$0xff]  }
  0x59   :  { %v1579_v2 = vld [vmem:[#allocation5 + $0x1b0] ss:$8 sps:$4 sm:$0xff]  }
  0x5b   :  { %645 = vmatpush2.bf16.msra.mxu0 %v1486_v3  ;;  %686 = vmatpush2.bf16.msra.mxu1 %v1489_v4  ;;  %v1584_v3 = vld [vmem:[#allocation5 + $0xa4] ss:$8 sps:$4 sm:$0xff]  }
  0x5c   :  { %646 = vmatprep.subr.bf16.mxu0 %v1494_v5  ;;  %687 = vmatprep.subr.bf16.mxu1 %v1497_v6  ;;  %v1587_v4 = vld [vmem:[#allocation5 + $0x1a4] ss:$8 sps:$4 sm:$0xff]   ;;  %v1582_v5 = vld [vmem:[#allocation5 + $0xa0] ss:$8 sps:$4 sm:$0xff]  }
  0x5d   :  { %v1585_v6 = vld [vmem:[#allocation5 + $0x1a0] ss:$8 sps:$4 sm:$0xff]  }
  0x5f   :  { %647 = vmatpush2.bf16.msra.mxu0 %v1492_v7  ;;  %688 = vmatpush2.bf16.msra.mxu1 %v1495_v8  ;;  %v1590_v7 = vld [vmem:[#allocation5 + $0x94] ss:$8 sps:$4 sm:$0xff]  }
  0x60   :  { %648 = vmatprep.subr.bf16.mxu0 %v1500_v9  ;;  %689 = vmatprep.subr.bf16.mxu1 %v1503_v10  ;;  %v1593_v8 = vld [vmem:[#allocation5 + $0x194] ss:$8 sps:$4 sm:$0xff]   ;;  %v1588_v9 = vld [vmem:[#allocation5 + $0x90] ss:$8 sps:$4 sm:$0xff]  }
  0x61   :  { %v1591_v10 = vld [vmem:[#allocation5 + $0x190] ss:$8 sps:$4 sm:$0xff]  }
  0x63   :  { %649 = vmatpush2.bf16.msra.mxu0 %v1498_v11  ;;  %690 = vmatpush2.bf16.msra.mxu1 %v1501_v13  ;;  %v1596_v11 = vld [vmem:[#allocation5 + $0x84] ss:$8 sps:$4 sm:$0xff]   ;;  %v1594_v13 = vld [vmem:[#allocation5 + $0x80] ss:$8 sps:$4 sm:$0xff]  }
  0x64   :  { %1138 = vmatprep.subr.bf16.mxu0 %v1506_v16  ;;  %1179 = vmatprep.subr.bf16.mxu1 %v1509_v18 }
  0x66   :  { %651 = vmatmul.mubr.bf16.vlgmr.msra.gmra.mxu0 %v64_v14  ;;  %692 = vmatmul.mubr.bf16.vlgmr.msra.gmra.mxu1 %v64_v14  ;;  %v1597_v14 = vld [vmem:[#allocation5 + $0x180] ss:$8 sps:$4 sm:$0xff]  }
  0x67   :  { %1139 = vmatpush1.bf16.msra.mxu0 %v1504_v15  ;;  %1180 = vmatpush1.bf16.msra.mxu1 %v1507_v17  ;;  %v702_v15 = vlaneseq }
  0x68   :  { %1140 = vmatprep.subr.bf16.mxu0 %v1512_v19  ;;  %1181 = vmatprep.subr.bf16.mxu1 %v1515_v20  ;;  %v700_v20 = vld [vmem:[%s1773_s4] sm:$0xf] }
  0x69   :  { %v703_v16 = vshrl.u32 %v702_v15, 7 }
  0x6b   :  { %1141 = vmatpush1.bf16.msra.mxu0 %v1510_v21  ;;  %1182 = vmatpush1.bf16.msra.mxu1 %v1513_v22  ;;  %v1747_v19 = vsub.s32 0, %v703_v16  ;;  %v712_v21 = vsub.s32 2, %v703_v16  ;;  %v1752_v22 = vsub.s32 1, %v703_v16 }
  0x6c   :  { %1142 = vmatprep.subr.bf16.mxu0 %v1518_v23  ;;  %1183 = vmatprep.subr.bf16.mxu1 %v1521_v24  ;;  %v716_v24 = vsub.s32 3, %v703_v16 }
  0x6f   :  { %1143 = vmatpush1.bf16.msra.mxu0 %v1516_v25  ;;  %1184 = vmatpush1.bf16.msra.mxu1 %v1519_v26  ;;  %v705_v26 = vrot.slane %v700_v20, %v1747_v19 }
  0x70   :  { %1144 = vmatprep.subr.bf16.mxu0 %v1524_v27  ;;  %1185 = vmatprep.subr.bf16.mxu1 %v1527_v28  ;;  %v713_v28 = vrot.slane %v700_v20, %v712_v21 }
  0x73   :  { %1145 = vmatpush1.bf16.msra.mxu0 %v1522_v29  ;;  %1186 = vmatpush1.bf16.msra.mxu1 %v1525_v30 }
  0x74   :  { %1146 = vmatprep.subr.bf16.mxu0 %v1530_v31  ;;  %1187 = vmatprep.subr.bf16.mxu1 %v1533_v32  ;;  %v709_v31 = vrot.slane %v700_v20, %v1752_v22 }
  0x77   :  { %1147 = vmatpush1.bf16.msra.mxu0 %v1528_v33  ;;  %1188 = vmatpush1.bf16.msra.mxu1 %v1531_v34  ;;  %v717_v34 = vrot.slane %v700_v20, %v716_v24  ;;  %v1399_v20 = vld [vmem:[#allocation2] ss:$0 sm:$0xff] }
  0x78   :  { %1148 = vmatprep.subr.bf16.mxu0 %v1536_v35  ;;  %1189 = vmatprep.subr.bf16.mxu1 %v1539_v36 }
  0x7b   :  { %1149 = vmatpush1.bf16.msra.mxu0 %v1534_v37  ;;  %1190 = vmatpush1.bf16.msra.mxu1 %v1537_v38 }
  0x7c   :  { %1150 = vmatprep.subr.bf16.mxu0 %v1542_v39  ;;  %1191 = vmatprep.subr.bf16.mxu1 %v1545_v40 }
  0x7f   :  { %1151 = vmatpush1.bf16.msra.mxu0 %v1540_v41  ;;  %1192 = vmatpush1.bf16.msra.mxu1 %v1543_v42 }
  0x80   :  { %1152 = vmatprep.subr.bf16.mxu0 %v1548_v43  ;;  %1193 = vmatprep.subr.bf16.mxu1 %v1551_v44 }
  0x83   :  { %1153 = vmatpush1.bf16.msra.mxu0 %v1546_v45  ;;  %1194 = vmatpush1.bf16.msra.mxu1 %v1549_v46 }
  0x84   :  { %1154 = vmatprep.subr.bf16.mxu0 %v1554_v47  ;;  %1195 = vmatprep.subr.bf16.mxu1 %v1557_v48 }
  0x87   :  { %1155 = vmatpush2.bf16.msra.mxu0 %v1552_v49  ;;  %1196 = vmatpush2.bf16.msra.mxu1 %v1555_v50 }
  0x88   :  { %1156 = vmatprep.subr.bf16.mxu0 %v1560_v51  ;;  %1197 = vmatprep.subr.bf16.mxu1 %v1563_v52 }
  0x8b   :  { %1157 = vmatpush2.bf16.msra.mxu0 %v1558_v53  ;;  %1198 = vmatpush2.bf16.msra.mxu1 %v1561_v54 }
  0x8c   :  { %1158 = vmatprep.subr.bf16.mxu0 %v1566_v55  ;;  %1199 = vmatprep.subr.bf16.mxu1 %v1569_v56 }
  0x8f   :  { %1159 = vmatpush2.bf16.msra.mxu0 %v1564_v57  ;;  %1200 = vmatpush2.bf16.msra.mxu1 %v1567_v58  ;;  %v806_v58 = vld [vmem:[%s1775_s6] sm:$0x3] }
  0x90   :  { %1160 = vmatprep.subr.bf16.mxu0 %v1572_v59  ;;  %1201 = vmatprep.subr.bf16.mxu1 %v1575_v60  ;;  %v811_v59 = vrot.slane %v806_v58, %v1747_v19  ;;  %v815_v60 = vrot.slane %v806_v58, %v1752_v22 }
  0x93   :  { %1161 = vmatpush2.bf16.msra.mxu0 %v1570_v61  ;;  %1202 = vmatpush2.bf16.msra.mxu1 %v1573_v62 }
  0x94   :  { %1162 = vmatprep.subr.bf16.mxu0 %v1578_v63  ;;  %1203 = vmatprep.subr.bf16.mxu1 %v1581_v0 }
  0x97   :  { %1163 = vmatpush2.bf16.msra.mxu0 %v1576_v1  ;;  %1204 = vmatpush2.bf16.msra.mxu1 %v1579_v2 }
  0x98   :  { %1164 = vmatprep.subr.bf16.mxu0 %v1584_v3  ;;  %1205 = vmatprep.subr.bf16.mxu1 %v1587_v4  ;;  %v1226_v4 = vld [vmem:[%s1776_s7] sm:$0x3] }
  0x9b   :  { %1165 = vmatpush2.bf16.msra.mxu0 %v1582_v5  ;;  %1206 = vmatpush2.bf16.msra.mxu1 %v1585_v6 }
  0x9c   :  { %1166 = vmatprep.subr.bf16.mxu0 %v1590_v7  ;;  %1207 = vmatprep.subr.bf16.mxu1 %v1593_v8 }
  0x9f   :  { %1167 = vmatpush2.bf16.msra.mxu0 %v1588_v9  ;;  %1208 = vmatpush2.bf16.msra.mxu1 %v1591_v10  ;;  %v1231_v10 = vrot.slane %v1226_v4, %v1747_v19 }
  0xa0   :  { %1168 = vmatprep.subr.bf16.mxu0 %v1596_v11  ;;  %1209 = vmatprep.subr.bf16.mxu1 %v1599_v12  ;;  %v1235_v11 = vrot.slane %v1226_v4, %v1752_v22 }
  0xa3   :  { %1169 = vmatpush2.bf16.msra.mxu0 %v1594_v13  ;;  %1210 = vmatpush2.bf16.msra.mxu1 %v1597_v14 }
  0xe5   :  { %v222_v17 = vpop.f32.mrf.mxu0  ;;  %v293_v18 = vpop.f32.mrf.mxu1 }
  0xe7   :  { %v224_v23 = vpop.f32.mrf.mxu0  ;;  %v295_v25 = vpop.f32.mrf.mxu1 }
 0x126   :  { %v652_v27 = vpop.f32.mrf.mxu0  ;;  %v693_v30 = vpop.f32.mrf.mxu1 }
 0x127   :  { %v653_v29 = vadd.f32 %v652_v27, %v222_v17  ;;  %v694_v32 = vadd.f32 %v693_v30, %v293_v18 }
 0x128   :  { %v654_v33 = vpop.f32.mrf.mxu0  ;;  %v695_v37 = vpop.f32.mrf.mxu1 }
 0x129   :  { %v722_v35 = vadd.f32 %v705_v26, %v653_v29  ;;  %v655_v36 = vadd.f32 %v654_v33, %v224_v23  ;;  %v724_v38 = vadd.f32 %v713_v28, %v694_v32  ;;  %v696_v39 = vadd.f32 %v695_v37, %v295_v25 }
 0x12a   :  { %v656_v40 = vpop.f32.mrf.mxu0  ;;  %v697_v43 = vpop.f32.mrf.mxu1 }
 0x12b   :  { %vm726_vm2 = vcmp.ge.f32.partialorder %v722_v35, 0.0  ;;  %v730_v41 = vmul.f32 0.2, %v722_v35  ;;  %v723_v42 = vadd.f32 %v709_v31, %v655_v36  ;;  %vm728_vm3 = vcmp.ge.f32.partialorder %v724_v38, 0.0 }
 0x12c   :  { %v732_v44 = vmul.f32 0.2, %v724_v38  ;;  %v725_v45 = vadd.f32 %v717_v34, %v696_v39  ;;  %v657_v46 = vpop.f32.mrf.mxu0  ;;  %v698_v48 = vpop.f32.mrf.mxu1 }
 0x12d   :  { %v731_v47 = vmul.f32 0.2, %v723_v42  ;;  %vm727_vm4 = vcmp.ge.f32.partialorder %v723_v42, 0.0  ;;  %v734_v49 = vsel %vm726_vm2, %v722_v35, %v730_v41 }
 0x12e   :  { %v733_v50 = vmul.f32 0.2, %v725_v45  ;;  %vm729_vm5 = vcmp.ge.f32.partialorder %v725_v45, 0.0  ;;  %v736_v51 = vsel %vm728_vm3, %v724_v38, %v732_v44  ;;  %v738_v55 = vpack.c.bf16 %v734_v49, %v734_v49 }
 0x12f   :  { %v735_v52 = vsel %vm727_vm4, %v723_v42, %v731_v47  ;;  %v740_v57 = vpack.c.bf16 %v736_v51, %v736_v51 }
 0x130   :  { %v739_v53 = vpack.c.bf16 %v735_v52, %v735_v52  ;;  %v737_v54 = vsel %vm729_vm5, %v725_v45, %v733_v50 }
 0x131   :  { %v741_v56 = vpack.c.bf16 %v737_v54, %v737_v54 }
 0x132   :  { %1170 = vmatprep.mubr.bf16.mxu0 %v739_v53 }
 0x133   :  { %1211 = vmatprep.mubr.bf16.mxu1 %v741_v56  ;;  %1171 = vmatmul.mubr.bf16.vlgmr.msra.gmra.mxu0 %v738_v55 }
 0x134   :  { %1212 = vmatmul.mubr.bf16.vlgmr.msra.gmra.mxu1 %v740_v57 }
 0x1f3   :  { %v1172_v61 = vpop.f32.mrf.mxu0 }
 0x1f4   :  { %v1173_v62 = vadd.f32 %v1172_v61, %v811_v59  ;;  %v1213_v63 = vpop.f32.mrf.mxu1 }
 0x1f5   :  { %v1174_v0 = vpop.f32.mrf.mxu0 }
 0x1f6   :  { %v1214_v1 = vadd.f32 %v1213_v63, %v1173_v62  ;;  %v1175_v2 = vadd.f32 %v1174_v0, %v815_v60  ;;  %v1215_v3 = vpop.f32.mrf.mxu1 }
 0x1f7   :  { %v1176_v5 = vpop.f32.mrf.mxu0 }
 0x1f8   :  { %vm1220_vm6 = vcmp.ge.f32.partialorder %v1214_v1, 0.0  ;;  %v1222_v6 = vmul.f32 0.2, %v1214_v1  ;;  %v1216_v7 = vadd.f32 %v1215_v3, %v1175_v2  ;;  %v1217_v8 = vpop.f32.mrf.mxu1 }
 0x1f9   :  { %v1177_v9 = vpop.f32.mrf.mxu0 }
 0x1fa   :  { %vm1221_vm7 = vcmp.ge.f32.partialorder %v1216_v7, 0.0  ;;  %v1223_v12 = vmul.f32 0.2, %v1216_v7  ;;  %v1218_v13 = vpop.f32.mrf.mxu1  ;;  %v1224_v14 = vsel %vm1220_vm6, %v1214_v1, %v1222_v6 }
 0x1fb   :  { %v1238_v16 = vmul.f32 %v1231_v10, %v1224_v14 }
 0x1fc   :  { %v1225_v15 = vsel %vm1221_vm7, %v1216_v7, %v1223_v12 }
 0x1fd   :  { %v1239_v17 = vmul.f32 %v1235_v11, %v1225_v15 }
 0x1ff   :  { %v1240_v18 = vadd.f32 %v1239_v17, %v1238_v16 }
 0x201   :  { %1241 = vadd.xlane.f32.xlu0 %v1240_v18 }
 0x28a   :  { %v1242_v21 = vpop.xlane.xlu0 %1241 }
 0x28b   :  { %v1250_v23 = vadd.f32 %v1399_v20, %v1242_v21 }
 0x28d   :  { %v1400_v24 = vmul.f32 -1.442695, %v1250_v23 }
 0x28f   :  { %1600 = vpow2.f32 %v1400_v24 }
 0x29c   :  { %v1601_v25 = vpop.eup %1600 }
 0x29d   :  { %v1254_v26 = vadd.f32 1.0, %v1601_v25 }
 0x29f   :  { %1602 = vrcp.f32 %v1254_v26 }
 0x2ac   :  { %v1603_v19 = vpop.eup %1602 }
 0x2ad   :  { %1258 = vst.msk [vmem:[%s1778_s9] sm:$0xff] %vm1257_vm8, %v1603_v19 }
 0x2ae   :  { %1263 = vsyncpa [#allocation4], 1 }
 0x2af   :  { %1264 = vsyncpa [#allocation6], 1 }

</bundles_post_ra>
